<compile_context>
chip_gen: v6e
topology: v6e:2x2x1
jax: 0.10.0
libtpu: 0.0.40
codegen_flags: <defaults>
</compile_context>

<pallas_src>
import functools

import jax
import jax.numpy as jnp
from jax.experimental import pallas as pl
from jax.experimental.pallas import tpu as pltpu

_LANE = 128
_SMALL_B_SUBLANES = 16  # bf16 packs 16 sublanes per vreg


def _round_up(x, m):
    return -(-x // m) * m


def _mlp_kernel(x_ref, w1_ref, b1_ref, w2_ref, b2_ref, o_ref):
    # Cast x to the matmul dtype in-kernel (free VPU work; avoids an extra
    # HBM read+write pass over x in the wrapper).
    x = x_ref[...].astype(w1_ref.dtype)
    # linear1 on the MXU: bf16 operands, f32 accumulation.
    h = jnp.dot(x, w1_ref[...], preferred_element_type=jnp.float32)
    # Bias add + ReLU in f32 (lane-dense: hidden padded to 128).
    h = jnp.maximum(h + b1_ref[...], 0.0)
    # linear2 on the MXU: cast activations to the weight dtype, accumulate f32.
    y = jnp.dot(h.astype(w2_ref.dtype), w2_ref[...],
                preferred_element_type=jnp.float32)
    y = y + b2_ref[...]
    # Lane-dense store (out_pad = multiple of 128); bf16 storage halves
    # writeback bytes when the matmul path is bf16.
    o_ref[...] = y.astype(o_ref.dtype)


def prepare_params(w1, b1, w2, b2, *, use_bf16=True):
    """One-time parameter preprocessing (hoisted out of the jitted forward).

    w1: (input_size, hidden_size)   b1: (hidden_size,) or (1, hidden_size)
    w2: (hidden_size, output_size)  b2: (output_size,) or (1, output_size)
    Returns (w1p, b1p, w2p, b2p, out_dim) ready to feed the forward.
    """
    in_dim, hid = w1.shape
    out_dim = w2.shape[1]
    b1 = jnp.reshape(b1, (1, hid))
    b2 = jnp.reshape(b2, (1, out_dim))

    hid_pad = _round_up(hid, _LANE)
    out_pad = _round_up(out_dim, _LANE)

    if hid_pad != hid:
        w1 = jnp.pad(w1, ((0, 0), (0, hid_pad - hid)))
        b1 = jnp.pad(b1, ((0, 0), (0, hid_pad - hid)))
        w2 = jnp.pad(w2, ((0, hid_pad - hid), (0, 0)))
    if out_pad != out_dim:
        w2 = jnp.pad(w2, ((0, 0), (0, out_pad - out_dim)))
        b2 = jnp.pad(b2, ((0, 0), (0, out_pad - out_dim)))

    mm_dtype = jnp.bfloat16 if use_bf16 else jnp.float32
    return (w1.astype(mm_dtype), b1.astype(jnp.float32),
            w2.astype(mm_dtype), b2.astype(jnp.float32), out_dim)


@functools.partial(jax.jit, static_argnames=("out_dim",))
def lifetime_model_forward(x, w1p, b1p, w2p, b2p, *, out_dim):
    """Fused LifetimeModel forward.

    x: (B, input_size) in its native dtype.  Parameters must come from
    prepare_params().  Returns (B, output_size) in x.dtype.
    """
    B, in_dim = x.shape
    hid_pad = w1p.shape[1]
    out_pad = w2p.shape[1]

    # --- batch tiling (no padding of x; ragged last block handled by Pallas) --
    if B <= 1024:
        block_b = _round_up(B, _SMALL_B_SUBLANES)          # single grid step
    else:
        # 1-2K row tiles; grid length >= 2 so both v7x TensorCores get work.
        block_b = min(2048, _round_up(pl.cdiv(B, 2), 256))
    grid = (pl.cdiv(B, block_b),)

    out_store_dtype = (jnp.bfloat16 if w1p.dtype == jnp.bfloat16
                       else jnp.float32)

    flops = 2 * B * (in_dim * hid_pad + hid_pad * out_pad)
    bytes_accessed = (
        x.size * x.dtype.itemsize
        + w1p.size * w1p.dtype.itemsize
        + w2p.size * w2p.dtype.itemsize
        + b1p.size * 4 + b2p.size * 4
        + B * out_pad * jnp.dtype(out_store_dtype).itemsize
    )

    out_padded = pl.pallas_call(
        _mlp_kernel,
        out_shape=jax.ShapeDtypeStruct((B, out_pad), out_store_dtype),
        grid_spec=pltpu.PrefetchScalarGridSpec(
            num_scalar_prefetch=0,
            grid=grid,
            in_specs=[
                # x: tile over batch, full feature dim.
                pl.BlockSpec((block_b, in_dim), lambda i: (i, 0)),
                # Parameters: full arrays, constant block index (kept resident).
                pl.BlockSpec((in_dim, hid_pad), lambda i: (0, 0)),
                pl.BlockSpec((1, hid_pad), lambda i: (0, 0)),
                pl.BlockSpec((hid_pad, out_pad), lambda i: (0, 0)),
                pl.BlockSpec((1, out_pad), lambda i: (0, 0)),
            ],
            out_specs=pl.BlockSpec((block_b, out_pad), lambda i: (i, 0)),
        ),
        compiler_params=pltpu.CompilerParams(
            dimension_semantics=("parallel",),
        ),
        cost_estimate=pl.CostEstimate(
            flops=flops, transcendentals=0, bytes_accessed=bytes_accessed
        ),
    )(x, w1p, b1p, w2p, b2p)

    return out_padded[:, :out_dim].astype(x.dtype)


# ---------------------------------------------------------------------------
# References for numerical checks.
# ---------------------------------------------------------------------------
def _reference_forward_f32(x, w1, b1, w2, b2):
    h = jnp.maximum(x @ w1 + b1, 0.0)
    return h @ w2 + b2


def _reference_forward_kernel_numerics(x, w1, b1, w2, b2):
    # Mirrors the kernel: bf16 operands, f32 accumulation, bf16 output storage.
    h = jnp.dot(x.astype(jnp.bfloat16), w1.astype(jnp.bfloat16),
                preferred_element_type=jnp.float32) + b1
    h = jnp.maximum(h, 0.0)
    y = jnp.dot(h.astype(jnp.bfloat16), w2.astype(jnp.bfloat16),
                preferred_element_type=jnp.float32) + b2
    return y.astype(jnp.bfloat16).astype(jnp.float32)


if __name__ == "__main__":
    # Shapes consistent with the module: batch=16, input=8, hidden=32, output=4
    batch, input_size, hidden_size, output_size = 16, 8, 32, 4

    key = jax.random.PRNGKey(0)
    kx, kw1, kb1, kw2, kb2, kx2 = jax.random.split(key, 6)

    x = jax.random.normal(kx, (batch, input_size), dtype=jnp.float32)

    # PyTorch-Linear-like uniform init, stored already transposed to (in, out).
    bound1 = 1.0 / (input_size ** 0.5)
    w1 = jax.random.uniform(kw1, (input_size, hidden_size), jnp.float32, -bound1, bound1)
    b1 = jax.random.uniform(kb1, (1, hidden_size), jnp.float32, -bound1, bound1)

    bound2 = 1.0 / (hidden_size ** 0.5)
    w2 = jax.random.uniform(kw2, (hidden_size, output_size), jnp.float32, -bound2, bound2)
    b2 = jax.random.uniform(kb2, (1, output_size), jnp.float32, -bound2, bound2)

    # One-time parameter preprocessing (model setup).
    w1p, b1p, w2p, b2p, out_dim = prepare_params(w1, b1, w2, b2, use_bf16=True)

    # --- small batch (single-grid-step path) ---------------------------------
    out = lifetime_model_forward(x, w1p, b1p, w2p, b2p, out_dim=out_dim)
    out = jax.block_until_ready(out)
    assert out.shape == (batch, output_size)

    ref_kn = _reference_forward_kernel_numerics(x, w1, b1, w2, b2)
    assert jnp.allclose(out, ref_kn, atol=5e-3, rtol=1e-2), "mismatch vs kernel-numerics ref"

    ref_f32 = _reference_forward_f32(x, w1, b1, w2, b2)
    assert jnp.allclose(out, ref_f32, atol=5e-2, rtol=5e-2), "mismatch vs f32 reference"

    # --- large ragged batch (multi-step, v7x dual-TC path) --------------------
    big_b = 4099  # not a multiple of the block size: exercises masked last block
    x_big = jax.random.normal(kx2, (big_b, input_size), dtype=jnp.float32)
    out_big = lifetime_model_forward(x_big, w1p, b1p, w2p, b2p, out_dim=out_dim)
    out_big = jax.block_until_ready(out_big)
    assert out_big.shape == (big_b, output_size)

    ref_big = _reference_forward_kernel_numerics(x_big, w1, b1, w2, b2)
    assert jnp.allclose(out_big, ref_big, atol=5e-3, rtol=2e-2), "mismatch (large batch)"

    print("KERNEL_OK")
</pallas_src>

<mosaic_0001>
module attributes {stable_mosaic.version = 11 : i64} {
  func.func @_mlp_kernel(%arg0: i32, %arg1: memref<16x8xf32, #tpu.memory_space<vmem>>, %arg2: memref<8x128xbf16, #tpu.memory_space<vmem>>, %arg3: memref<1x128xf32, #tpu.memory_space<vmem>>, %arg4: memref<128x128xbf16, #tpu.memory_space<vmem>>, %arg5: memref<1x128xf32, #tpu.memory_space<vmem>>, %arg6: memref<16x128xbf16, #tpu.memory_space<vmem>>) attributes {dimension_semantics = [#tpu.dimension_semantics<parallel>], iteration_bounds = array<i64: 1>, scalar_prefetch = 0 : i64, scratch_operands = 0 : i64, tpu.core_type = #tpu.core_type<tc>, window_params = [{transform_indices = @transform_0, window_bounds = array<i64: 16, 8>}, {pipeline_mode = #tpu.pipeline_mode<synchronous>, transform_indices = @transform_1, window_bounds = array<i64: 8, 128>}, {pipeline_mode = #tpu.pipeline_mode<synchronous>, transform_indices = @transform_2, window_bounds = array<i64: 1, 128>}, {pipeline_mode = #tpu.pipeline_mode<synchronous>, transform_indices = @transform_3, window_bounds = array<i64: 128, 128>}, {pipeline_mode = #tpu.pipeline_mode<synchronous>, transform_indices = @transform_4, window_bounds = array<i64: 1, 128>}, {transform_indices = @transform_5, window_bounds = array<i64: 16, 128>}]} {
    %c0 = arith.constant 0 : index
    %c0_0 = arith.constant 0 : index
    %0 = vector.load %arg1[%c0, %c0_0] : memref<16x8xf32, #tpu.memory_space<vmem>>, vector<16x8xf32>
    %1 = arith.truncf %0 : vector<16x8xf32> to vector<16x8xbf16>
    %c0_1 = arith.constant 0 : index
    %c0_2 = arith.constant 0 : index
    %2 = vector.load %arg2[%c0_1, %c0_2] : memref<8x128xbf16, #tpu.memory_space<vmem>>, vector<8x128xbf16>
    %cst = arith.constant dense<0.000000e+00> : vector<16x128xf32>
    %3 = tpu.matmul %1, %2, %cst {dimension_numbers = #tpu.dot_dimension_numbers<[1], [0], [0], [1], [0, 0, 1, 1], [], []>} : vector<16x8xbf16>, vector<8x128xbf16>, vector<16x128xf32> -> vector<16x128xf32>
    %c0_3 = arith.constant 0 : index
    %c0_4 = arith.constant 0 : index
    %4 = vector.load %arg3[%c0_3, %c0_4] : memref<1x128xf32, #tpu.memory_space<vmem>>, vector<1x128xf32>
    %5 = vector.broadcast %4 : vector<1x128xf32> to vector<16x128xf32>
    %6 = arith.addf %3, %5 : vector<16x128xf32>
    %cst_5 = arith.constant 0.000000e+00 : f32
    %7 = vector.broadcast %cst_5 : f32 to vector<16x128xf32>
    %8 = arith.maximumf %6, %7 : vector<16x128xf32>
    %9 = arith.truncf %8 : vector<16x128xf32> to vector<16x128xbf16>
    %c0_6 = arith.constant 0 : index
    %c0_7 = arith.constant 0 : index
    %10 = vector.load %arg4[%c0_6, %c0_7] : memref<128x128xbf16, #tpu.memory_space<vmem>>, vector<128x128xbf16>
    %cst_8 = arith.constant dense<0.000000e+00> : vector<16x128xf32>
    %11 = tpu.matmul %9, %10, %cst_8 {dimension_numbers = #tpu.dot_dimension_numbers<[1], [0], [0], [1], [0, 0, 1, 1], [], []>} : vector<16x128xbf16>, vector<128x128xbf16>, vector<16x128xf32> -> vector<16x128xf32>
    %c0_9 = arith.constant 0 : index
    %c0_10 = arith.constant 0 : index
    %12 = vector.load %arg5[%c0_9, %c0_10] : memref<1x128xf32, #tpu.memory_space<vmem>>, vector<1x128xf32>
    %13 = vector.broadcast %12 : vector<1x128xf32> to vector<16x128xf32>
    %14 = arith.addf %11, %13 : vector<16x128xf32>
    %15 = arith.truncf %14 : vector<16x128xf32> to vector<16x128xbf16>
    %c0_11 = arith.constant 0 : index
    %c0_12 = arith.constant 0 : index
    %16 = vector.load %arg6[%c0_11, %c0_12] : memref<16x128xbf16, #tpu.memory_space<vmem>>, vector<16x128xbf16>
    tpu.vector_store %arg6[%c0_11, %c0_12], %15 {strides = array<i32>} : memref<16x128xbf16, #tpu.memory_space<vmem>>, vector<16x128xbf16>,
    return
  }
  func.func @transform_0(%arg0: i32) -> (i32, i32) {
    %c0_i32 = arith.constant 0 : i32
    %c0_i32_0 = arith.constant 0 : i32
    return %arg0, %c0_i32 : i32, i32
  }
  func.func @transform_1(%arg0: i32) -> (i32, i32) {
    %c0_i32 = arith.constant 0 : i32
    %c0_i32_0 = arith.constant 0 : i32
    %c0_i32_1 = arith.constant 0 : i32
    return %c0_i32, %c0_i32_0 : i32, i32
  }
  func.func @transform_2(%arg0: i32) -> (i32, i32) {
    %c0_i32 = arith.constant 0 : i32
    %c0_i32_0 = arith.constant 0 : i32
    %c0_i32_1 = arith.constant 0 : i32
    return %c0_i32, %c0_i32_0 : i32, i32
  }
  func.func @transform_3(%arg0: i32) -> (i32, i32) {
    %c0_i32 = arith.constant 0 : i32
    %c0_i32_0 = arith.constant 0 : i32
    %c0_i32_1 = arith.constant 0 : i32
    return %c0_i32, %c0_i32_0 : i32, i32
  }
  func.func @transform_4(%arg0: i32) -> (i32, i32) {
    %c0_i32 = arith.constant 0 : i32
    %c0_i32_0 = arith.constant 0 : i32
    %c0_i32_1 = arith.constant 0 : i32
    return %c0_i32, %c0_i32_0 : i32, i32
  }
  func.func @transform_5(%arg0: i32) -> (i32, i32) {
    %c0_i32 = arith.constant 0 : i32
    %c0_i32_0 = arith.constant 0 : i32
    return %arg0, %c0_i32 : i32, i32
  }
}

</mosaic_0001>

<bundles_post_ra>
// kernel: lifetime_model_forward.1
= control target key start
LH: loop header
LB: loop body
LE: loop exit
PB: predicated region body
PF: predicated region fallthrough
CT: control target
= control target key end

     0   :  { %10 = vsyncpa [#allocation3], 0  ;;  %s317_s18 = smov [#allocation2]   ;;  %s373_s0 = inlined_call_operand.vmem [shape: f32[16,8], index: 0, kind: input, shape index: {}]   ;;  %s374_s1 = inlined_call_operand.vmem [shape: bf16[8,128], index: 1, kind: input, shape index: {}]   ;;  %s375_s2 = inlined_call_operand.vmem [shape: f32[1,128], index: 2, kind: input, shape index: {}]   ;;  %s376_s3 = inlined_call_operand.hbm [shape: bf16[128,128], index: 3, kind: input, shape index: {}]   ;;  %s377_s4 = inlined_call_operand.vmem [shape: f32[1,128], index: 4, kind: input, shape index: {}]   ;;  %s378_s5 = inlined_call_operand.vmem [shape: bf16[16,128], index: 5, kind: output, shape index: {}]  }
   0x1   :  { %s22_s19 = sshll.u32 %s317_s18, 4  ;;  %s23_s19 = int_to_ptr.vmem [resolvable:$true] %s22_s19 }
   0x2   :  { %s303_s20 = scalar_lea.vmem %s23_s19, 1024  ;;  %p308_p1 = scmp.lt.s32.totalorder %s23_s19, %s23_s19 }
   0x3   :  { %p304_p0 = scmp.ne.s32.totalorder %s23_s19, %s303_s20  ;;  %p309_p2 = scmp.lt.s32.totalorder %s303_s20, %s303_s20 }
   0x5   :  { %p310_p3 = por %p309_p2, %p308_p1 }
   0x7   :  { %p311_p4 = pnand %p310_p3, %p304_p0 }
   0x9   :  { %314 = shalt.err (!%p311_p4)
}
   0xa   :  { %s318_s21 = smov 64   ;;  %s319_s22 = smov 4  }
   0xb   :  { %28 = dma.hbm_to_vmem [thread:$0]  %s376_s3, 1024, %s23_s19, [#allocation3], %s318_s21, %s318_s21, %s319_s22  }
   0xc   :  { %315 = dma.done.wait [#allocation3], 1024  }
   0xd   :  { %316 = vsyncadd [#allocation3], 4294966272  ;;  %v320_v0 = vmov 0.0   ;;  %vm321_vm0 = vmmov 0   ;;  %vm50_vm1 = vcmask 1043456   ;;  %v35_v2 = vld [vmem:[%s373_s0] sm:$0xff] }
   0xe   :  { %256 = vmatprep.subr.bf16.mxu0 %v320_v0  ;;  %258 = vmatprep.mubr.msk.bf16.mxu0 %vm321_vm0, %v320_v0  ;;  %v38_v1 = vld [vmem:[%s374_s1] sm:$0xf]  ;;  %v36_v3 = vld [vmem:[%s373_s0 + $0x8] sm:$0xff]  ;;  %v287_v6 = vld [vmem:[#allocation2 + $0x38] sm:$0xff]   ;;  %vm46_vm2 = vcmask 64512  }
   0xf   :  { %262 = vmatprep.subr.bf16.mxu1 %v320_v0  ;;  %278 = vmatprep.mubr.msk.bf16.mxu1 %vm321_vm0, %v320_v0  ;;  %v52_v4 = vsel %vm50_vm1, %v38_v1, 0  ;;  %v37_v5 = vpack.c.bf16 %v36_v3, %v35_v2  ;;  %v288_v7 = vld [vmem:[#allocation2 + $0x30] sm:$0xff]   ;;  %v289_v8 = vld [vmem:[#allocation2 + $0x28] sm:$0xff]   ;;  %v290_v9 = vld [vmem:[#allocation2 + $0x20] sm:$0xff]  }
  0x10   :  { %257 = vmatpush3.bf16.msra.mxu0 %v52_v4  ;;  %263 = vmatpush3.bf16.msra.mxu1 %v287_v6  ;;  %v291_v10 = vld [vmem:[#allocation2 + $0x18] sm:$0xff]   ;;  %v292_v11 = vld [vmem:[#allocation2 + $0x10] sm:$0xff]   ;;  %v293_v12 = vld [vmem:[#allocation2 + $0x8] sm:$0xff]  }
  0x11   :  { %264 = vmatprep.subr.bf16.mxu1 %v320_v0  ;;  %v294_v13 = vld [vmem:[#allocation2] sm:$0xff]  }
  0x12   :  { %v225_v14 = vld [vmem:[%s375_s2] ss:$0 sm:$0xff] }
  0x13   :  { %259 = vmatmul.mubr.msk.bf16.vlgmr.msra.gmra.mxu0 %vm46_vm2, %v37_v5  ;;  %v227_v25 = vld [vmem:[%s377_s4] ss:$0 sm:$0xff] }
  0x14   :  { %265 = vmatpush3.bf16.msra.mxu1 %v288_v7 }
  0x15   :  { %266 = vmatprep.subr.bf16.mxu1 %v320_v0 }
  0x18   :  { %267 = vmatpush3.bf16.msra.mxu1 %v289_v8 }
  0x19   :  { %268 = vmatprep.subr.bf16.mxu1 %v320_v0 }
  0x1c   :  { %269 = vmatpush3.bf16.msra.mxu1 %v290_v9 }
  0x1d   :  { %270 = vmatprep.subr.bf16.mxu1 %v320_v0 }
  0x20   :  { %271 = vmatpush3.bf16.msra.mxu1 %v291_v10 }
  0x21   :  { %272 = vmatprep.subr.bf16.mxu1 %v320_v0 }
  0x24   :  { %273 = vmatpush3.bf16.msra.mxu1 %v292_v11 }
  0x25   :  { %274 = vmatprep.subr.bf16.mxu1 %v320_v0 }
  0x28   :  { %275 = vmatpush3.bf16.msra.mxu1 %v293_v12 }
  0x29   :  { %276 = vmatprep.subr.bf16.mxu1 %v320_v0 }
  0x2c   :  { %277 = vmatpush3.bf16.msra.mxu1 %v294_v13 }
  0xd3   :  { %v88_v15 = vpop.f32.mrf.mxu0 }
  0xd4   :  { %v89_v17 = vadd.f32 %v225_v14, %v88_v15 }
  0xd5   :  { %v260_v16 = vpop.f32.mrf.mxu0 }
  0xd6   :  { %v95_v21 = vmax.f32 %v89_v17, 0.0 }
  0xd7   :  { %v91_v18 = vpop.f32.mrf.mxu0 }
  0xd8   :  { %v92_v19 = vadd.f32 %v225_v14, %v91_v18 }
  0xd9   :  { %v261_v20 = vpop.f32.mrf.mxu0 }
  0xda   :  { %v96_v22 = vmax.f32 %v92_v19, 0.0 }
  0xdc   :  { %v97_v23 = vpack.c.bf16 %v96_v22, %v95_v21 }
  0xde   :  { %279 = vmatmul.mubr.bf16.vlgmr.msra.gmra.mxu1 %v97_v23 }
 0x19e   :  { %v203_v24 = vpop.f32.mrf.mxu1 }
 0x19f   :  { %v204_v28 = vadd.f32 %v227_v25, %v203_v24 }
 0x1a0   :  { %v280_v26 = vpop.f32.mrf.mxu1 }
 0x1a2   :  { %v206_v27 = vpop.f32.mrf.mxu1 }
 0x1a3   :  { %v207_v29 = vadd.f32 %v227_v25, %v206_v27 }
 0x1a4   :  { %v281_v30 = vpop.f32.mrf.mxu1 }
 0x1a5   :  { %v243_v31 = vpack.c.bf16 %v207_v29, %v204_v28 }
 0x1a7   :  { %244 = vst [vmem:[%s378_s5] sm:$0xff] %v243_v31  }
 0x1a8   :  { %224 = vsyncpa [#allocation3], 1 }

</bundles_post_ra>
